<compile_context>
chip_gen: v7x
topology: tpu7x:2x2x1
jax: 0.10.0
libtpu: 0.0.40
codegen_flags: <defaults>
</compile_context>

<pallas_src>
import jax
import jax.numpy as jnp
from jax.experimental import pallas as pl
from jax.experimental.pallas import tpu as pltpu


# Only bother splitting the DMA into concurrent chunks for "large" tensors;
# below this a single descriptor is already negligible overhead.
_MIN_BYTES_FOR_CHUNKING = 4 * 1024 * 1024
_MAX_DMA_CHUNKS = 4


def _single_dma_kernel(x_hbm, o_hbm, sem):
    """One HBM->HBM DMA of the whole array. No VMEM round trip."""
    cp = pltpu.make_async_copy(x_hbm, o_hbm, sem)
    cp.start()
    cp.wait()


def _make_chunked_dma_kernel(chunks):
    """Issue several concurrent HBM->HBM DMAs over static slabs of axis 0.

    All copies are started before any wait, so the DMA engines can overlap.
    `chunks` is a static Python list of (start_row, num_rows).
    """

    def kernel(x_hbm, o_hbm, sems):
        copies = []
        for i, (start, size) in enumerate(chunks):
            cp = pltpu.make_async_copy(
                x_hbm.at[pl.ds(start, size)],
                o_hbm.at[pl.ds(start, size)],
                sems.at[i],
            )
            cp.start()
            copies.append(cp)
        for cp in copies:
            cp.wait()

    return kernel


def _split_leading_axis(dim0: int, n_chunks: int):
    """Static, near-even split of the leading axis into up to n_chunks slabs."""
    base, rem = divmod(dim0, n_chunks)
    chunks = []
    start = 0
    for i in range(n_chunks):
        size = base + (1 if i < rem else 0)
        if size == 0:
            continue
        chunks.append((start, size))
        start += size
    return chunks


def identity(x: jax.Array) -> jax.Array:
    """Identity.forward(data) -> data, via a direct HBM->HBM DMA Pallas kernel."""
    # Trivial cases: nothing worth launching a kernel for (also the review's
    # top recommendation — a real nn.Identity should just return its input).
    if x.ndim == 0 or x.size == 0:
        return x

    total_bytes = x.size * jnp.dtype(x.dtype).itemsize
    hbm_spec = pl.BlockSpec(memory_space=pl.ANY)  # raw HBM ref, no auto-DMA

    # For large multi-dim inputs, split axis 0 into a few concurrent DMAs
    # (whole-row slabs, so slices never cut across the trailing-dim layout).
    use_chunks = (
        x.ndim >= 2
        and x.shape[0] >= 2
        and total_bytes >= _MIN_BYTES_FOR_CHUNKING
    )

    if use_chunks:
        chunks = _split_leading_axis(x.shape[0], min(_MAX_DMA_CHUNKS, x.shape[0]))
        kernel = _make_chunked_dma_kernel(chunks)
        scratch = [pltpu.SemaphoreType.DMA((len(chunks),))]
    else:
        kernel = _single_dma_kernel
        scratch = [pltpu.SemaphoreType.DMA]

    return pl.pallas_call(
        kernel,
        out_shape=jax.ShapeDtypeStruct(x.shape, x.dtype),
        in_specs=[hbm_spec],
        out_specs=hbm_spec,
        scratch_shapes=scratch,
    )(x)


if __name__ == "__main__":
    key = jax.random.PRNGKey(0)

    # Small NCHW-style input: batch=2, channels=4, H=W=16.
    x = jax.random.normal(key, (2, 4, 16, 16), dtype=jnp.float32)
    y = identity(x)
    jax.block_until_ready(y)
    assert y.shape == x.shape and y.dtype == x.dtype
    assert jnp.array_equal(y, x), "Identity kernel output mismatch (f32)"

    # bf16 input — DMA path is dtype/layout agnostic.
    xb = jax.random.normal(jax.random.PRNGKey(0), (2, 4, 16, 16)).astype(jnp.bfloat16)
    yb = identity(xb)
    jax.block_until_ready(yb)
    assert yb.shape == xb.shape and yb.dtype == xb.dtype
    assert jnp.array_equal(yb, xb), "Identity kernel output mismatch (bf16)"

    # Odd, non-128-multiple shape — previously hit the masked-store fallback;
    # now handled by the same layout-agnostic DMA.
    xo = jax.random.normal(jax.random.PRNGKey(0), (3, 5, 7), dtype=jnp.float32)
    yo = identity(xo)
    jax.block_until_ready(yo)
    assert yo.shape == xo.shape and jnp.array_equal(yo, xo), "mismatch (odd shape)"

    # 1-D input — single whole-array DMA.
    x1 = jax.random.normal(jax.random.PRNGKey(0), (1000,), dtype=jnp.float32)
    y1 = identity(x1)
    jax.block_until_ready(y1)
    assert y1.shape == x1.shape and jnp.array_equal(y1, x1), "mismatch (1-D)"

    # 4 MiB input — exercises the concurrent chunked-DMA path.
    xl = jax.random.normal(jax.random.PRNGKey(0), (8, 256, 512), dtype=jnp.float32)
    yl = identity(xl)
    jax.block_until_ready(yl)
    assert yl.shape == xl.shape and jnp.array_equal(yl, xl), "mismatch (chunked)"

    print("KERNEL_OK")
</pallas_src>

<mosaic_0001>
module attributes {stable_mosaic.version = 11 : i64} {
  func.func @_single_dma_kernel(%arg0: memref<2x4x16x16xf32, #tpu.memory_space<any>>, %arg1: memref<2x4x16x16xf32, #tpu.memory_space<any>>, %arg2: memref<!tpu.dma_semaphore, #tpu.memory_space<semaphore_mem>>) attributes {dimension_semantics = [], scalar_prefetch = 0 : i64, scratch_operands = 1 : i64, tpu.core_type = #tpu.core_type<tc>} {
    tpu.enqueue_dma source(%arg0 : memref<2x4x16x16xf32, #tpu.memory_space<any>>) target(%arg1 : memref<2x4x16x16xf32, #tpu.memory_space<any>>) target_semaphore(%arg2 : memref<!tpu.dma_semaphore, #tpu.memory_space<semaphore_mem>>)
    tpu.wait_dma2 semaphore(%arg2 : memref<!tpu.dma_semaphore, #tpu.memory_space<semaphore_mem>>) src(%arg0 : memref<2x4x16x16xf32, #tpu.memory_space<any>>) dst(%arg1 : memref<2x4x16x16xf32, #tpu.memory_space<any>>)
    return
  }
}

</mosaic_0001>

<bundles_post_ra>
// kernel: tpu_custom_call.1
= control target key start
LH: loop header
LB: loop body
LE: loop exit
PB: predicated region body
PF: predicated region fallthrough
CT: control target
= control target key end

     0   :  { %s36_s6 = smov [#allocation2]   ;;  %s37_s7 = smov [#allocation3]   ;;  %s55_s0 = inlined_call_operand.hbm [shape: f32[2,4,16,16], index: 0, kind: input, shape index: {}]   ;;  %s56_s1 = inlined_call_operand.hbm [shape: f32[2,4,16,16], index: 1, kind: output, shape index: {}]  }
   0x1   :  { %s38_s8 = smov 0  }
   0x2   :  { %18 = dma.general %s55_s0, 2048, %s56_s1, %s36_s6, %s37_s7, [#allocation4], %s38_s8, 0  }
   0x3   :  { %34 = dma.done.wait [#allocation2], 2048 }
   0x4   :  { %35 = vsyncadd [#allocation2], 4294965248 }
   0x5   :  { %24 = vsyncmov [#allocation2] }
   0x8   :  { %s25_s13 = vpop.sfrf %24 }
   0x9   :  { %p30_p0 = scmp.ne.s32.totalorder %s25_s13, 0 }
   0xb   :  { %29 = shalt.err (%p30_p0)  }

</bundles_post_ra>
